<compile_context>
chip_gen: v5e
topology: v5e:2x2
jax: 0.10.0
libtpu: 0.0.40
codegen_flags: <defaults>
</compile_context>

<pallas_src>
import functools

import jax
import jax.numpy as jnp
from jax import lax
from jax.experimental import pallas as pl
from jax.experimental.pallas import tpu as pltpu


def _round_up(x, m):
    return (x + m - 1) // m * m


def _pack_kernel(b_ref, k_ref, k2_ref, v_ref, o_ref, w_acc_ref, *,
                 p, n_valid, n_padded):
    """One N-tile of the streamed reduction.

    b_ref  : [Bp, Dp]  padded query batch (resident every step)
    k_ref  : [tn, Dp]  current tile of stacked sample keys
    k2_ref : [1,  tn]  precomputed ||k||^2 for this tile (lane-dense row)
    v_ref  : [tn, Vp]  current tile of stacked sample values
    o_ref  : [Bp, Vp]  output block, constant over the N axis -> f32 accumulator for sum_v
    w_acc  : [Bp, 1]   VMEM scratch accumulator for sum_w
    """
    n_idx = pl.program_id(0)
    tn = k_ref.shape[0]

    @pl.when(n_idx == 0)
    def _init():
        o_ref[...] = jnp.zeros_like(o_ref)
        w_acc_ref[...] = jnp.zeros_like(w_acc_ref)

    b = b_ref[...]                                            # [Bp, Dp]
    k = k_ref[...]                                            # [tn, Dp]
    v = v_ref[...]                                            # [tn, Vp]

    # dist2[i, n] = ||b_i - k_n||^2 = ||b_i||^2 - 2 b_i . k_n + ||k_n||^2
    b2 = jnp.sum(b * b, axis=1, keepdims=True)                # [Bp, 1] (cheap, per-tile)
    cross = lax.dot_general(                                  # [Bp, tn] (MXU, no k.T)
        b, k, dimension_numbers=(((1,), (1,)), ((), ())),
        preferred_element_type=jnp.float32)
    dist2 = b2 - 2.0 * cross + k2_ref[...]                    # [Bp, tn]

    if p == 2:
        # sqrt and pow cancel: clamp(dist**2, 1e-6) == clamp(dist2, 1e-6)
        w = 1.0 / jnp.maximum(dist2, 1e-6)
    else:
        dist_p = jnp.maximum(dist2, 1e-30) ** (0.5 * p)       # dist**p with one pow
        w = 1.0 / jnp.maximum(dist_p, 1e-6)

    if n_valid != n_padded:  # static: mask padded keys so they contribute nothing
        col = n_idx * tn + lax.broadcasted_iota(jnp.int32, (1, tn), 1)
        w = jnp.where(col < n_valid, w, 0.0)

    # Accumulate sum_w (column layout, cheap lane reduce) and sum_v (MXU).
    w_acc_ref[...] += jnp.sum(w, axis=1, keepdims=True)       # [Bp, 1]
    o_ref[...] += lax.dot_general(                            # [Bp, Vp]
        w, v, dimension_numbers=(((1,), (0,)), ((), ())),
        preferred_element_type=jnp.float32)

    @pl.when(n_idx == pl.num_programs(0) - 1)
    def _finalize():
        # PyTorch quirk: out[i, j] = sum_v[i, j] / sum_w[j]  (divide by the
        # weight of the COLUMN batch index).  Relayout the [Bp,1] column of
        # accumulated weights into a [1,Vp] lane-dense row once via a
        # mask+reduce "vector transpose" (robust; avoids an awkward [Bp,1]
        # transpose), then one reciprocal and one broadcast multiply.
        Bp, Vp = o_ref.shape
        r = lax.broadcasted_iota(jnp.int32, (Bp, Vp), 0)
        c = lax.broadcasted_iota(jnp.int32, (Bp, Vp), 1)
        w_row = jnp.sum(jnp.where(r == c, w_acc_ref[...], 0.0),
                        axis=0, keepdims=True)                # [1, Vp] == sum_w^T
        inv_row = pl.reciprocal(w_row, approx=False)
        o_ref[...] = o_ref[...] * inv_row


def pack_forward(b, keys, vals, p=2, tn_max=512):
    """b: [B, D], keys: [N, D], vals: [N, V] with V == B (PyTorch broadcast)."""
    B, D = b.shape
    N, Dk = keys.shape
    Nv, V = vals.shape
    assert Dk == D and Nv == N
    assert V == B, "torch broadcast `sum_v / sum_w` requires v_dim == batch"

    f32 = jnp.float32
    b = b.astype(f32)
    keys = keys.astype(f32)
    vals = vals.astype(f32)

    # Padding: B and V are tied by the broadcast quirk (column j divided by
    # sum_w of batch j), so both pad to the same 128-multiple; D pads to 128
    # for full-width MXU contractions; N pads to whole tiles (masked in-kernel).
    BVp = _round_up(B, 128)
    Dp = _round_up(D, 128)
    tn = min(tn_max, _round_up(N, 128))       # 128-aligned N tile
    Np = _round_up(N, tn)
    num_n = Np // tn

    b_p = jnp.zeros((BVp, Dp), f32).at[:B, :D].set(b)
    k_p = jnp.zeros((Np, Dp), f32).at[:N, :D].set(keys)
    v_p = jnp.zeros((Np, BVp), f32).at[:N, :V].set(vals)
    k2_p = jnp.sum(k_p * k_p, axis=1)[None, :]        # [1, Np], hoisted out of the kernel

    kernel = functools.partial(_pack_kernel, p=p, n_valid=N, n_padded=Np)

    out = pl.pallas_call(
        kernel,
        out_shape=jax.ShapeDtypeStruct((BVp, BVp), f32),
        grid=(num_n,),
        in_specs=[
            pl.BlockSpec((BVp, Dp), lambda n: (0, 0)),   # b: resident
            pl.BlockSpec((tn, Dp), lambda n: (n, 0)),    # keys: streamed over N
            pl.BlockSpec((1, tn), lambda n: (0, n)),     # ||k||^2 row: streamed
            pl.BlockSpec((tn, BVp), lambda n: (n, 0)),   # vals: streamed over N
        ],
        out_specs=pl.BlockSpec((BVp, BVp), lambda n: (0, 0)),  # resident accumulator
        scratch_shapes=[pltpu.VMEM((BVp, 1), f32)],            # sum_w accumulator
        compiler_params=pltpu.CompilerParams(
            dimension_semantics=("arbitrary",),                # N is a reduction axis
            vmem_limit_bytes=32 << 20,                         # legal on v5e/v6e/v7x
        ),
    )(b_p, k_p, k2_p, v_p)

    return out[:B, :V]


def pack_reference(b, keys, vals, p=2):
    """Pure-JAX mirror of the PyTorch loop (for verification)."""
    diff = keys[None, :, :] - b[:, None, :]                 # [B, N, D]
    dist = jnp.sqrt(jnp.sum(diff * diff, axis=-1))          # [B, N]
    w = 1.0 / jnp.maximum(dist ** p, 1e-6)                  # [B, N]
    sum_w = jnp.sum(w, axis=1)                              # [B]
    sum_v = w @ vals                                        # [B, V]
    return sum_v / sum_w[None, :]                           # torch broadcast (V == B)


if __name__ == "__main__":
    # Small, deterministic setup.
    B = 8      # batch size
    D = 16     # key dimension
    N = 6      # number of stored samples
    V = B      # v_dim (must equal B to match the module's broadcast)
    P = 2

    key = jax.random.PRNGKey(0)
    kb, kk, kv = jax.random.split(key, 3)

    b = jax.random.normal(kb, (B, D), dtype=jnp.float32)
    keys = jax.random.normal(kk, (N, D), dtype=jnp.float32)     # stacked sample keys
    vals = jax.random.normal(kv, (N, V), dtype=jnp.float32)     # stacked sample values

    out = pack_forward(b, keys, vals, p=P)
    out = jax.block_until_ready(out)

    ref = pack_reference(b, keys, vals, p=P)
    assert out.shape == (B, V) and out.dtype == jnp.float32
    assert jnp.allclose(out, ref, rtol=1e-3, atol=1e-3), "mismatch vs reference"

    print("KERNEL_OK")
</pallas_src>

<mosaic_0001>
module attributes {stable_mosaic.version = 11 : i64} {
  func.func @_pack_kernel(%arg0: i32, %arg1: memref<128x128xf32, #tpu.memory_space<vmem>>, %arg2: memref<128x128xf32, #tpu.memory_space<vmem>>, %arg3: memref<1x128xf32, #tpu.memory_space<vmem>>, %arg4: memref<128x128xf32, #tpu.memory_space<vmem>>, %arg5: memref<128x128xf32, #tpu.memory_space<vmem>>, %arg6: memref<128x1xf32, #tpu.memory_space<vmem>>) attributes {dimension_semantics = [#tpu.dimension_semantics<arbitrary>], iteration_bounds = array<i64: 1>, scalar_prefetch = 0 : i64, scratch_operands = 1 : i64, tpu.core_type = #tpu.core_type<tc>, window_params = [{pipeline_mode = #tpu.pipeline_mode<synchronous>, transform_indices = @transform_0, window_bounds = array<i64: 128, 128>}, {transform_indices = @transform_1, window_bounds = array<i64: 128, 128>}, {transform_indices = @transform_2, window_bounds = array<i64: 1, 128>}, {transform_indices = @transform_3, window_bounds = array<i64: 128, 128>}, {pipeline_mode = #tpu.pipeline_mode<synchronous>, transform_indices = @transform_4, window_bounds = array<i64: 128, 128>}]} {
    %c0_i32 = arith.constant 0 : i32
    %0 = arith.cmpi eq, %arg0, %c0_i32 : i32
    %1 = arith.extui %0 : i1 to i32
    %c0_i32_0 = arith.constant 0 : i32
    %2 = arith.cmpi ne, %1, %c0_i32_0 : i32
    scf.if %2 {
      %cst_25 = arith.constant 0.000000e+00 : f32
      %43 = vector.broadcast %cst_25 : f32 to vector<128x128xf32>
      %c0_26 = arith.constant 0 : index
      %c0_27 = arith.constant 0 : index
      %44 = vector.load %arg5[%c0_26, %c0_27] : memref<128x128xf32, #tpu.memory_space<vmem>>, vector<128x128xf32>
      tpu.vector_store %arg5[%c0_26, %c0_27], %43 {strides = array<i32>} : memref<128x128xf32, #tpu.memory_space<vmem>>, vector<128x128xf32>,
      %cst_28 = arith.constant 0.000000e+00 : f32
      %45 = vector.broadcast %cst_28 : f32 to vector<128x1xf32>
      %c0_29 = arith.constant 0 : index
      %c0_30 = arith.constant 0 : index
      %46 = vector.load %arg6[%c0_29, %c0_30] : memref<128x1xf32, #tpu.memory_space<vmem>>, vector<128x1xf32>
      tpu.vector_store %arg6[%c0_29, %c0_30], %45 {strides = array<i32>} : memref<128x1xf32, #tpu.memory_space<vmem>>, vector<128x1xf32>,
    } else {
    }
    %c0 = arith.constant 0 : index
    %c0_1 = arith.constant 0 : index
    %3 = vector.load %arg1[%c0, %c0_1] : memref<128x128xf32, #tpu.memory_space<vmem>>, vector<128x128xf32>
    %c0_2 = arith.constant 0 : index
    %c0_3 = arith.constant 0 : index
    %4 = vector.load %arg2[%c0_2, %c0_3] : memref<128x128xf32, #tpu.memory_space<vmem>>, vector<128x128xf32>
    %c0_4 = arith.constant 0 : index
    %c0_5 = arith.constant 0 : index
    %5 = vector.load %arg4[%c0_4, %c0_5] : memref<128x128xf32, #tpu.memory_space<vmem>>, vector<128x128xf32>
    %6 = arith.mulf %3, %3 : vector<128x128xf32>
    %cst = arith.constant dense<0.000000e+00> : vector<128xf32>
    %7 = vector.multi_reduction <add>, %6, %cst [1] : vector<128x128xf32> to vector<128xf32>
    %8 = vector.shape_cast %7 : vector<128xf32> to vector<128x1xf32>
    %cst_6 = arith.constant dense<0.000000e+00> : vector<128x128xf32>
    %9 = tpu.matmul %3, %4, %cst_6 {dimension_numbers = #tpu.dot_dimension_numbers<[1], [1], [0], [0], [0, 0, 1, 0], [], []>} : vector<128x128xf32>, vector<128x128xf32>, vector<128x128xf32> -> vector<128x128xf32>
    %cst_7 = arith.constant 2.000000e+00 : f32
    %10 = vector.broadcast %cst_7 : f32 to vector<128x128xf32>
    %11 = arith.mulf %10, %9 : vector<128x128xf32>
    %12 = vector.broadcast %8 : vector<128x1xf32> to vector<128x128xf32>
    %13 = arith.subf %12, %11 : vector<128x128xf32>
    %c0_8 = arith.constant 0 : index
    %c0_9 = arith.constant 0 : index
    %14 = vector.load %arg3[%c0_8, %c0_9] : memref<1x128xf32, #tpu.memory_space<vmem>>, vector<1x128xf32>
    %15 = vector.broadcast %14 : vector<1x128xf32> to vector<128x128xf32>
    %16 = arith.addf %13, %15 : vector<128x128xf32>
    %cst_10 = arith.constant 9.99999997E-7 : f32
    %17 = vector.broadcast %cst_10 : f32 to vector<128x128xf32>
    %18 = arith.maximumf %16, %17 : vector<128x128xf32>
    %cst_11 = arith.constant 1.000000e+00 : f32
    %19 = vector.broadcast %cst_11 : f32 to vector<128x128xf32>
    %20 = arith.divf %19, %18 : vector<128x128xf32>
    %c128_i32 = arith.constant 128 : i32
    %21 = arith.muli %arg0, %c128_i32 : i32
    %22 = tpu.iota {dimensions = array<i32: 1>} : vector<1x128xi32>
    %23 = vector.broadcast %21 : i32 to vector<1x128xi32>
    %24 = arith.addi %23, %22 : vector<1x128xi32>
    %c6_i32 = arith.constant 6 : i32
    %25 = vector.broadcast %c6_i32 : i32 to vector<1x128xi32>
    %26 = arith.cmpi slt, %24, %25 : vector<1x128xi32>
    %cst_12 = arith.constant 0.000000e+00 : f32
    %27 = vector.shape_cast %26 : vector<1x128xi1> to vector<1x128xi1>
    %28 = vector.broadcast %27 : vector<1x128xi1> to vector<128x128xi1>
    %29 = vector.broadcast %cst_12 : f32 to vector<128x128xf32>
    %30 = arith.select %28, %20, %29 : vector<128x128xi1>, vector<128x128xf32>
    %c0_13 = arith.constant 0 : index
    %c0_14 = arith.constant 0 : index
    %31 = vector.load %arg6[%c0_13, %c0_14] : memref<128x1xf32, #tpu.memory_space<vmem>>, vector<128x1xf32>
    %cst_15 = arith.constant dense<0.000000e+00> : vector<128xf32>
    %32 = vector.multi_reduction <add>, %30, %cst_15 [1] : vector<128x128xf32> to vector<128xf32>
    %33 = vector.shape_cast %32 : vector<128xf32> to vector<128x1xf32>
    %34 = arith.addf %31, %33 : vector<128x1xf32>
    %c0_16 = arith.constant 0 : index
    %c0_17 = arith.constant 0 : index
    %35 = vector.load %arg6[%c0_16, %c0_17] : memref<128x1xf32, #tpu.memory_space<vmem>>, vector<128x1xf32>
    tpu.vector_store %arg6[%c0_16, %c0_17], %34 {strides = array<i32>} : memref<128x1xf32, #tpu.memory_space<vmem>>, vector<128x1xf32>,
    %c0_18 = arith.constant 0 : index
    %c0_19 = arith.constant 0 : index
    %36 = vector.load %arg5[%c0_18, %c0_19] : memref<128x128xf32, #tpu.memory_space<vmem>>, vector<128x128xf32>
    %cst_20 = arith.constant dense<0.000000e+00> : vector<128x128xf32>
    %37 = tpu.matmul %30, %5, %cst_20 {dimension_numbers = #tpu.dot_dimension_numbers<[1], [0], [0], [1], [0, 0, 1, 1], [], []>} : vector<128x128xf32>, vector<128x128xf32>, vector<128x128xf32> -> vector<128x128xf32>
    %38 = arith.addf %36, %37 : vector<128x128xf32>
    %c0_21 = arith.constant 0 : index
    %c0_22 = arith.constant 0 : index
    %39 = vector.load %arg5[%c0_21, %c0_22] : memref<128x128xf32, #tpu.memory_space<vmem>>, vector<128x128xf32>
    tpu.vector_store %arg5[%c0_21, %c0_22], %38 {strides = array<i32>} : memref<128x128xf32, #tpu.memory_space<vmem>>, vector<128x128xf32>,
    %c0_i32_23 = arith.constant 0 : i32
    %40 = arith.cmpi eq, %arg0, %c0_i32_23 : i32
    %41 = arith.extui %40 : i1 to i32
    %c0_i32_24 = arith.constant 0 : i32
    %42 = arith.cmpi ne, %41, %c0_i32_24 : i32
    scf.if %42 {
      %43 = tpu.iota {dimensions = array<i32: 0>} : vector<128x128xi32>
      %44 = tpu.iota {dimensions = array<i32: 1>} : vector<128x128xi32>
      %45 = arith.cmpi eq, %43, %44 : vector<128x128xi32>
      %c0_25 = arith.constant 0 : index
      %c0_26 = arith.constant 0 : index
      %46 = vector.load %arg6[%c0_25, %c0_26] : memref<128x1xf32, #tpu.memory_space<vmem>>, vector<128x1xf32>
      %cst_27 = arith.constant 0.000000e+00 : f32
      %47 = vector.shape_cast %46 : vector<128x1xf32> to vector<128x1xf32>
      %48 = vector.broadcast %47 : vector<128x1xf32> to vector<128x128xf32>
      %49 = vector.broadcast %cst_27 : f32 to vector<128x128xf32>
      %50 = arith.select %45, %48, %49 : vector<128x128xi1>, vector<128x128xf32>
      %cst_28 = arith.constant dense<0.000000e+00> : vector<128xf32>
      %51 = vector.multi_reduction <add>, %50, %cst_28 [0] : vector<128x128xf32> to vector<128xf32>
      %52 = vector.shape_cast %51 : vector<128xf32> to vector<1x128xf32>
      %53 = tpu.reciprocal %52 : vector<1x128xf32> -> vector<1x128xf32>
      %c0_29 = arith.constant 0 : index
      %c0_30 = arith.constant 0 : index
      %54 = vector.load %arg5[%c0_29, %c0_30] : memref<128x128xf32, #tpu.memory_space<vmem>>, vector<128x128xf32>
      %55 = vector.broadcast %53 : vector<1x128xf32> to vector<128x128xf32>
      %56 = arith.mulf %54, %55 : vector<128x128xf32>
      %c0_31 = arith.constant 0 : index
      %c0_32 = arith.constant 0 : index
      %57 = vector.load %arg5[%c0_31, %c0_32] : memref<128x128xf32, #tpu.memory_space<vmem>>, vector<128x128xf32>
      tpu.vector_store %arg5[%c0_31, %c0_32], %56 {strides = array<i32>} : memref<128x128xf32, #tpu.memory_space<vmem>>, vector<128x128xf32>,
    } else {
    }
    return
  }
  func.func @transform_0(%arg0: i32) -> (i32, i32) {
    %c0_i32 = arith.constant 0 : i32
    %c0_i32_0 = arith.constant 0 : i32
    %c0_i32_1 = arith.constant 0 : i32
    return %c0_i32, %c0_i32_0 : i32, i32
  }
  func.func @transform_1(%arg0: i32) -> (i32, i32) {
    %c0_i32 = arith.constant 0 : i32
    %c0_i32_0 = arith.constant 0 : i32
    return %arg0, %c0_i32 : i32, i32
  }
  func.func @transform_2(%arg0: i32) -> (i32, i32) {
    %c0_i32 = arith.constant 0 : i32
    %c0_i32_0 = arith.constant 0 : i32
    return %c0_i32, %arg0 : i32, i32
  }
  func.func @transform_3(%arg0: i32) -> (i32, i32) {
    %c0_i32 = arith.constant 0 : i32
    %c0_i32_0 = arith.constant 0 : i32
    return %arg0, %c0_i32 : i32, i32
  }
  func.func @transform_4(%arg0: i32) -> (i32, i32) {
    %c0_i32 = arith.constant 0 : i32
    %c0_i32_0 = arith.constant 0 : i32
    %c0_i32_1 = arith.constant 0 : i32
    return %c0_i32, %c0_i32_0 : i32, i32
  }
}

</mosaic_0001>

<bundles_post_ra>
// kernel: tpu_custom_call.1
= control target key start
LH: loop header
LB: loop body
LE: loop exit
PB: predicated region body
PF: predicated region fallthrough
CT: control target
= control target key end

     0   :  { %9 = vsyncpa [#allocation4], 0  ;;  %s1861_s0 = inlined_call_operand.hbm [shape: f32[128,128], index: 0, kind: input, shape index: {}]   ;;  %s1862_s1 = inlined_call_operand.hbm [shape: f32[128,128], index: 1, kind: input, shape index: {}]   ;;  %s1863_s2 = inlined_call_operand.vmem [shape: f32[1,128], index: 2, kind: input, shape index: {}]   ;;  %s1864_s3 = inlined_call_operand.hbm [shape: f32[128,128], index: 3, kind: input, shape index: {}]   ;;  %s1865_s4 = inlined_call_operand.hbm [shape: f32[128,128], index: 4, kind: output, shape index: {}]  }
   0x1   :  { %10 = vsyncpa [#allocation7], 0 }
   0x2   :  { %11 = vsyncpa [#allocation5], 0  ;;  %s29_s17 = sshll.u32 %s1862_s1, 4  ;;  %s1268_s18 = smov [#allocation6]   ;;  %s30_s17 = int_to_ptr.hbm [resolvable:$true] %s29_s17 }
   0x3   :  { %s31_s19 = sshll.u32 %s1268_s18, 4  ;;  %s16_s22 = sshll.u32 %s1861_s0, 4  ;;  %s32_s19 = int_to_ptr.vmem [resolvable:$true] %s31_s19  ;;  %s17_s22 = int_to_ptr.hbm [resolvable:$true] %s16_s22 }
   0x4   :  { %s1269_s23 = smov 128   ;;  %s1270_s24 = smov 8  }
   0x5   :  { %37 = dma.hbm_to_vmem [thread:$0]  %s30_s17, 2048, %s32_s19, [#allocation7], %s1269_s23, %s1269_s23, %s1270_s24  }
   0x6   :  { %s1271_s25 = smov [#allocation3]   ;;  %s44_s1 = sshll.u32 %s1864_s3, 4  ;;  %s45_s1 = int_to_ptr.hbm [resolvable:$true] %s44_s1 }
   0x7   :  { %s18_s26 = sshll.u32 %s1271_s25, 4  ;;  %s1272_s0 = smov [#allocation8]   ;;  %s19_s26 = int_to_ptr.vmem [resolvable:$true] %s18_s26 }
   0x8   :  { %24 = dma.hbm_to_vmem [thread:$0]  %s17_s22, 2048, %s19_s26, [#allocation4], %s1269_s23, %s1269_s23, %s1270_s24  }
   0x9   :  { %s46_s29 = sshll.u32 %s1272_s0, 4  ;;  %s47_s29 = int_to_ptr.vmem [resolvable:$true] %s46_s29 }
   0xa   :  { %52 = dma.hbm_to_vmem [thread:$0]  %s45_s1, 2048, %s47_s29, [#allocation7], %s1269_s23, %s1269_s23, %s1270_s24  }
   0xb   :  { %1262 = dma.done.wait [#allocation4], 2048  }
   0xc   :  { %1263 = vsyncadd [#allocation4], 4294965248 }
   0xd   :  { %1264 = dma.done.wait [#allocation7], 4096  }
   0xe   :  { %1265 = vsyncadd [#allocation7], 4294963200  ;;  %v133_v0 = vld [vmem:[#allocation6 + $0x78] sm:$0xff]  ;;  %v132_v1 = vld [vmem:[#allocation6 + $0x70] sm:$0xff]  ;;  %s1026_s8 = sshll.u32 %s1865_s4, 4  ;;  %s1027_s8 = int_to_ptr.hbm [resolvable:$true] %s1026_s8 }
   0xf   :  { %198 = vmatpush.xpose.msra.mxu0 %v133_v0  ;;  %1056 = vmatpush.xpose.msra.mxu2 %v133_v0  ;;  %v131_v2 = vld [vmem:[#allocation6 + $0x68] sm:$0xff]  ;;  %v1319_v3 = vld [vmem:[#allocation3 + $0x10] sm:$0xff]  ;;  %v130_v4 = vld [vmem:[#allocation6 + $0x60] sm:$0xff] }
  0x10   :  { %1057 = vmatpush.xpose.msra.mxu3 %v133_v0  ;;  %v152_v5 = vmul.f32 %v1319_v3, %v1319_v3  ;;  %v129_v6 = vld [vmem:[#allocation6 + $0x58] sm:$0xff]  ;;  %v128_v8 = vld [vmem:[#allocation6 + $0x50] sm:$0xff]  ;;  %v1327_v10 = vld [vmem:[#allocation3 + $0x20] sm:$0xff] }
  0x11   :  { %v1323_v7 = vld [vmem:[#allocation3 + $0x18] sm:$0xff]  ;;  %v154_v11 = vmul.f32 %v1327_v10, %v1327_v10  ;;  %v127_v12 = vld [vmem:[#allocation6 + $0x48] sm:$0xff]  ;;  %v1331_v13 = vld [vmem:[#allocation3 + $0x40] sm:$0xff] }
  0x12   :  { %170 = vadd.xlane.f32.xlu0 %v152_v5  ;;  %v153_v9 = vmul.f32 %v1323_v7, %v1323_v7  ;;  %v126_v14 = vld [vmem:[#allocation6 + $0x40] sm:$0xff]  ;;  %v158_v15 = vmul.f32 %v1331_v13, %v1331_v13  ;;  %v1335_v16 = vld [vmem:[#allocation3 + $0x30] sm:$0xff]  ;;  %v1337_v17 = vld [vmem:[#allocation3 + $0x28] sm:$0xff] }
  0x13   :  { %199 = vmatpush.xpose.msra.mxu0 %v132_v1  ;;  %1058 = vmatpush.xpose.msra.mxu2 %v132_v1  ;;  %v156_v18 = vmul.f32 %v1335_v16, %v1335_v16  ;;  %v155_v19 = vmul.f32 %v1337_v17, %v1337_v17  ;;  %v125_v20 = vld [vmem:[#allocation6 + $0x38] sm:$0xff]  ;;  %v1343_v21 = vld [vmem:[#allocation3 + $0x50] sm:$0xff]  ;;  %v1345_v23 = vld [vmem:[#allocation3 + $0x48] sm:$0xff] }
  0x14   :  { %1059 = vmatpush.xpose.msra.mxu3 %v132_v1  ;;  %174 = vadd.xlane.f32.xlu1 %v154_v11  ;;  %v109_v22 = vld [vmem:[#allocation3 + $0x38] sm:$0xff]  ;;  %v124_v24 = vld [vmem:[#allocation6 + $0x30] sm:$0xff]  ;;  %v160_v25 = vmul.f32 %v1343_v21, %v1343_v21  ;;  %v159_v27 = vmul.f32 %v1345_v23, %v1345_v23  ;;  %v123_v28 = vld [vmem:[#allocation6 + $0x28] sm:$0xff] }
  0x15   :  { %178 = vadd.xlane.f32.xlu2 %v156_v18  ;;  %v157_v26 = vmul.f32 %v109_v22, %v109_v22  ;;  %v115_v29 = vld [vmem:[#allocation3 + $0x68] sm:$0xff]  ;;  %v116_v30 = vld [vmem:[#allocation3 + $0x70] sm:$0xff]  ;;  %v122_v31 = vld [vmem:[#allocation6 + $0x20] sm:$0xff] }
  0x16   :  { %v102_v32 = vld [vmem:[#allocation3] sm:$0xff]  ;;  %v164_v33 = vmul.f32 %v116_v30, %v116_v30  ;;  %v163_v34 = vmul.f32 %v115_v29, %v115_v29  ;;  %v121_v36 = vld [vmem:[#allocation6 + $0x18] sm:$0xff]  ;;  %v103_v38 = vld [vmem:[#allocation3 + $0x8] sm:$0xff] }
  0x17   :  { %200 = vmatpush.xpose.msra.mxu0 %v131_v2  ;;  %1060 = vmatpush.xpose.msra.mxu2 %v131_v2  ;;  %v150_v35 = vmul.f32 %v102_v32, %v102_v32  ;;  %v114_v37 = vld [vmem:[#allocation3 + $0x60] sm:$0xff]  ;;  %v120_v40 = vld [vmem:[#allocation6 + $0x10] sm:$0xff]  ;;  %v151_v41 = vmul.f32 %v103_v38, %v103_v38  ;;  %v119_v42 = vld [vmem:[#allocation6 + $0x8] sm:$0xff] }
  0x18   :  { %1061 = vmatpush.xpose.msra.mxu3 %v131_v2  ;;  %v162_v39 = vmul.f32 %v114_v37, %v114_v37  ;;  %v118_v43 = vld [vmem:[#allocation6] sm:$0xff]  ;;  %v117_v44 = vld [vmem:[#allocation3 + $0x78] sm:$0xff]  ;;  %v148_v49 = vld [vmem:[#allocation8 + $0x70] sm:$0xff] }
  0x19   :  { %v165_v45 = vmul.f32 %v117_v44, %v117_v44  ;;  %v113_v46 = vld [vmem:[#allocation3 + $0x58] sm:$0xff]  ;;  %v147_v50 = vld [vmem:[#allocation8 + $0x68] sm:$0xff]  ;;  %v146_v53 = vld [vmem:[#allocation8 + $0x60] sm:$0xff] }
  0x1a   :  { %172 = vadd.xlane.f32.xlu0 %v153_v9  ;;  %v161_v47 = vmul.f32 %v113_v46, %v113_v46  ;;  %v149_v48 = vld [vmem:[#allocation8 + $0x78] sm:$0xff]  ;;  %v144_v56 = vld [vmem:[#allocation8 + $0x50] sm:$0xff]  ;;  %v143_v57 = vld [vmem:[#allocation8 + $0x48] sm:$0xff] }
  0x1b   :  { %201 = vmatpush.xpose.msra.mxu0 %v130_v4  ;;  %1062 = vmatpush.xpose.msra.mxu2 %v130_v4  ;;  %v145_v55 = vld [vmem:[#allocation8 + $0x58] sm:$0xff]  ;;  %v142_v59 = vld [vmem:[#allocation8 + $0x40] sm:$0xff]  ;;  %v140_v63 = vld [vmem:[#allocation8 + $0x30] sm:$0xff] }
  0x1c   :  { %1063 = vmatpush.xpose.msra.mxu3 %v130_v4  ;;  %176 = vadd.xlane.f32.xlu1 %v155_v19  ;;  %v141_v61 = vld [vmem:[#allocation8 + $0x38] sm:$0xff]  ;;  %v139_v0 = vld [vmem:[#allocation8 + $0x28] sm:$0xff]  ;;  %v138_v1 = vld [vmem:[#allocation8 + $0x20] sm:$0xff] }
  0x1d   :  { %180 = vadd.xlane.f32.xlu2 %v157_v26  ;;  %1088 = vmatpush.msra.mxu1 %v149_v48  ;;  %v136_v5 = vld [vmem:[#allocation8 + $0x10] sm:$0xff] }
  0x1f   :  { %202 = vmatpush.xpose.msra.mxu0 %v129_v6  ;;  %1064 = vmatpush.xpose.msra.mxu2 %v129_v6 }
  0x20   :  { %1065 = vmatpush.xpose.msra.mxu3 %v129_v6  ;;  %1090 = vmatpush.msra.mxu1 %v148_v49 }
  0x22   :  { %182 = vadd.xlane.f32.xlu0 %v158_v15  ;;  %1092 = vmatpush.msra.mxu1 %v147_v50 }
  0x23   :  { %203 = vmatpush.xpose.msra.mxu0 %v128_v8  ;;  %1066 = vmatpush.xpose.msra.mxu2 %v128_v8 }
  0x24   :  { %1067 = vmatpush.xpose.msra.mxu3 %v128_v8  ;;  %184 = vadd.xlane.f32.xlu1 %v159_v27  ;;  %v134_v8 = vld [vmem:[#allocation8] sm:$0xff] }
  0x25   :  { %192 = vadd.xlane.f32.xlu2 %v163_v34  ;;  %1094 = vmatpush.msra.mxu1 %v146_v53 }
  0x27   :  { %204 = vmatpush.xpose.msra.mxu0 %v127_v12  ;;  %1068 = vmatpush.xpose.msra.mxu2 %v127_v12 }
  0x28   :  { %1069 = vmatpush.xpose.msra.mxu3 %v127_v12  ;;  %1096 = vmatpush.msra.mxu1 %v145_v55 }
  0x2a   :  { %186 = vadd.xlane.f32.xlu0 %v160_v25  ;;  %1098 = vmatpush.msra.mxu1 %v144_v56 }
  0x2b   :  { %205 = vmatpush.xpose.msra.mxu0 %v126_v14  ;;  %1070 = vmatpush.xpose.msra.mxu2 %v126_v14 }
  0x2c   :  { %1071 = vmatpush.xpose.msra.mxu3 %v126_v14  ;;  %166 = vadd.xlane.f32.xlu1 %v150_v35  ;;  %v1380_v14 = vld [vmem:[%s1863_s2] ss:$0 sm:$0xff]  ;;  %s1275_s2 = smov [#allocation9]  }
  0x2d   :  { %168 = vadd.xlane.f32.xlu2 %v151_v41  ;;  %1100 = vmatpush.msra.mxu1 %v143_v57  ;;  %s1024_s5 = sshll.u32 %s1275_s2, 4  ;;  %s1025_s5 = int_to_ptr.vmem [resolvable:$true] %s1024_s5 }
  0x2f   :  { %206 = vmatpush.xpose.msra.mxu0 %v125_v20  ;;  %1072 = vmatpush.xpose.msra.mxu2 %v125_v20 }
  0x30   :  { %1073 = vmatpush.xpose.msra.mxu3 %v125_v20  ;;  %1102 = vmatpush.msra.mxu1 %v142_v59 }
  0x32   :  { %194 = vadd.xlane.f32.xlu0 %v164_v33  ;;  %1104 = vmatpush.msra.mxu1 %v141_v61 }
  0x33   :  { %207 = vmatpush.xpose.msra.mxu0 %v124_v24  ;;  %1074 = vmatpush.xpose.msra.mxu2 %v124_v24 }
  0x34   :  { %1075 = vmatpush.xpose.msra.mxu3 %v124_v24  ;;  %188 = vadd.xlane.f32.xlu1 %v161_v47 }
  0x35   :  { %196 = vadd.xlane.f32.xlu2 %v165_v45  ;;  %1106 = vmatpush.msra.mxu1 %v140_v63 }
  0x37   :  { %208 = vmatpush.xpose.msra.mxu0 %v123_v28  ;;  %1076 = vmatpush.xpose.msra.mxu2 %v123_v28 }
  0x38   :  { %1077 = vmatpush.xpose.msra.mxu3 %v123_v28  ;;  %1108 = vmatpush.msra.mxu1 %v139_v0  ;;  %v572_v28 = vlaneseq }
  0x3a   :  { %190 = vadd.xlane.f32.xlu0 %v162_v39  ;;  %1110 = vmatpush.msra.mxu1 %v138_v1 }
  0x3b   :  { %209 = vmatpush.xpose.msra.mxu0 %v122_v31  ;;  %1078 = vmatpush.xpose.msra.mxu2 %v122_v31 }
  0x3c   :  { %1079 = vmatpush.xpose.msra.mxu3 %v122_v31 }
  0x3f   :  { %210 = vmatpush.xpose.msra.mxu0 %v121_v36  ;;  %1080 = vmatpush.xpose.msra.mxu2 %v121_v36 }
  0x40   :  { %1081 = vmatpush.xpose.msra.mxu3 %v121_v36  ;;  %v1391_v36 = vand.u32 127, %v572_v28 }
  0x42   :  { %vm576_vm3 = vcmp.lt.s32.totalorder %v1391_v36, 6 }
  0x43   :  { %211 = vmatpush.xpose.msra.mxu0 %v120_v40  ;;  %1082 = vmatpush.xpose.msra.mxu2 %v120_v40 }
  0x44   :  { %1083 = vmatpush.xpose.msra.mxu3 %v120_v40 }
  0x47   :  { %212 = vmatpush.xpose.msra.mxu0 %v119_v42  ;;  %1084 = vmatpush.xpose.msra.mxu2 %v119_v42 }
  0x48   :  { %1085 = vmatpush.xpose.msra.mxu3 %v119_v42 }
  0x4b   :  { %213 = vmatpush.xpose.msra.mxu0 %v118_v43  ;;  %1086 = vmatpush.xpose.msra.mxu2 %v118_v43 }
  0x4c   :  { %1087 = vmatpush.xpose.msra.mxu3 %v118_v43 }
  0x4e   :  { %214 = vmatmul.f32.vlgmr.msra.gmra.mxu0 %v102_v32  ;;  %229 = vmatmul.f32.vlgmr.msra.gmra.mxu2 %v1337_v17 }
  0x4f   :  { %250 = vmatmul.f32.vlgmr.msra.gmra.mxu3 %v114_v37  ;;  %692 = vmatpush.msrb.mxu0 %v149_v48 }
  0x50   :  { %1089 = vmatpush.msrb.mxu3 %v149_v48 }
  0x51   :  { %693 = vmatpush.msrb.mxu0 %v148_v49 }
  0x52   :  { %1091 = vmatpush.msrb.mxu3 %v148_v49 }
  0x53   :  { %694 = vmatpush.msrb.mxu0 %v147_v50 }
  0x54   :  { %1093 = vmatpush.msrb.mxu3 %v147_v50 }
  0x55   :  { %695 = vmatpush.msrb.mxu0 %v146_v53 }
  0x56   :  { %217 = vmatmul.f32.gmra.mxu0 %v103_v38  ;;  %232 = vmatmul.f32.gmra.mxu2 %v1335_v16 }
  0x57   :  { %253 = vmatmul.f32.gmra.mxu3 %v115_v29  ;;  %696 = vmatpush.msrb.mxu0 %v145_v55 }
  0x58   :  { %1095 = vmatpush.msrb.mxu3 %v146_v53 }
  0x59   :  { %697 = vmatpush.msrb.mxu0 %v144_v56 }
  0x5a   :  { %1097 = vmatpush.msrb.mxu3 %v145_v55 }
  0x5b   :  { %698 = vmatpush.msrb.mxu0 %v143_v57 }
  0x5c   :  { %1099 = vmatpush.msrb.mxu3 %v144_v56 }
  0x5d   :  { %699 = vmatpush.msrb.mxu0 %v142_v59 }
  0x5e   :  { %220 = vmatmul.f32.gmra.mxu0 %v1319_v3  ;;  %235 = vmatmul.f32.gmra.mxu2 %v109_v22  ;;  %v137_v3 = vld [vmem:[#allocation8 + $0x18] sm:$0xff] }
  0x5f   :  { %256 = vmatmul.f32.gmra.mxu3 %v116_v30  ;;  %700 = vmatpush.msrb.mxu0 %v141_v61 }
  0x60   :  { %1101 = vmatpush.msrb.mxu3 %v143_v57  ;;  %1112 = vmatpush.msra.mxu1 %v137_v3 }
  0x61   :  { %701 = vmatpush.msrb.mxu0 %v140_v63 }
  0x62   :  { %1103 = vmatpush.msrb.mxu3 %v142_v59  ;;  %1114 = vmatpush.msra.mxu1 %v136_v5 }
  0x63   :  { %702 = vmatpush.msrb.mxu0 %v139_v0 }
  0x64   :  { %1105 = vmatpush.msrb.mxu3 %v141_v61 }
  0x65   :  { %703 = vmatpush.msrb.mxu0 %v138_v1 }
  0x66   :  { %223 = vmatmul.f32.gmra.mxu0 %v1323_v7  ;;  %238 = vmatmul.f32.gmra.mxu2 %v1331_v13  ;;  %v135_v7 = vld [vmem:[#allocation8 + $0x8] sm:$0xff] }
  0x67   :  { %259 = vmatmul.f32.gmra.mxu3 %v117_v44  ;;  %704 = vmatpush.msrb.mxu0 %v137_v3 }
  0x68   :  { %1107 = vmatpush.msrb.mxu3 %v140_v63  ;;  %1116 = vmatpush.msra.mxu1 %v135_v7 }
  0x69   :  { %705 = vmatpush.msrb.mxu0 %v136_v5 }
  0x6a   :  { %1109 = vmatpush.msrb.mxu3 %v139_v0  ;;  %1118 = vmatpush.msra.mxu1 %v134_v8 }
  0x6b   :  { %706 = vmatpush.msrb.mxu0 %v135_v7 }
  0x6c   :  { %1111 = vmatpush.msrb.mxu3 %v138_v1 }
  0x6d   :  { %707 = vmatpush.msrb.mxu0 %v134_v8 }
  0x6e   :  { %226 = vmatmul.f32.gmra.mxu0 %v1327_v10  ;;  %241 = vmatmul.f32.gmra.mxu2 %v1345_v23 }
  0x6f   :  { %1113 = vmatpush.msrb.mxu3 %v137_v3 }
  0x71   :  { %1115 = vmatpush.msrb.mxu3 %v136_v5 }
  0x73   :  { %1117 = vmatpush.msrb.mxu3 %v135_v7 }
  0x75   :  { %1119 = vmatpush.msrb.mxu3 %v134_v8 }
  0x76   :  { %244 = vmatmul.f32.gmra.mxu2 %v1343_v21 }
  0x7e   :  { %247 = vmatmul.f32.gmra.mxu2 %v113_v46 }
  0x85   :  { %v1359_v51 = vpop.xlane.xlu0 %170 }
  0x87   :  { %v1363_v54 = vpop.xlane.xlu1 %174 }
  0x88   :  { %v1367_v60 = vpop.xlane.xlu2 %178 }
  0x8d   :  { %v1361_v52 = vpop.xlane.xlu0 %172 }
  0x8f   :  { %v177_v62 = vpop.xlane.xlu1 %176 }
  0x90   :  { %v1371_v4 = vpop.xlane.xlu2 %180 }
  0x95   :  { %v1365_v58 = vpop.xlane.xlu0 %182 }
  0x97   :  { %v1373_v6 = vpop.xlane.xlu1 %184 }
  0x98   :  { %v193_v10 = vpop.xlane.xlu2 %192 }
  0x9d   :  { %v1369_v2 = vpop.xlane.xlu0 %186 }
  0x9f   :  { %v167_v12 = vpop.xlane.xlu1 %166 }
  0xa0   :  { %v169_v24 = vpop.xlane.xlu2 %168 }
  0xa5   :  { %v1375_v9 = vpop.xlane.xlu0 %194 }
  0xad   :  { %v191_v21 = vpop.xlane.xlu0 %190 }
  0xcb   :  { %v215_v11 = vpop.f32.mrf.mxu0 }
  0xcc   :  { %v263_v13 = vmul.f32 2.0, %v215_v11 }
  0xce   :  { %v279_v15 = vsub.f32 %v167_v12, %v263_v13 }
  0xd0   :  { %v299_v16 = vadd.f32 %v1380_v14, %v279_v15 }
  0xd1   :  { %v230_v17 = vpop.f32.mrf.mxu2 }
  0xd2   :  { %v315_v18 = vmax.f32 %v299_v16, 1e-06  ;;  %v268_v19 = vmul.f32 2.0, %v230_v17  ;;  %v251_v20 = vpop.f32.mrf.mxu3 }
  0xd3   :  { %v275_v22 = vmul.f32 2.0, %v251_v20  ;;  %v218_v23 = vpop.f32.mrf.mxu0 }
  0xd4   :  { %1132 = vrcp.f32 %v315_v18  ;;  %v284_v25 = vsub.f32 %v177_v62, %v268_v19  ;;  %v264_v26 = vmul.f32 2.0, %v218_v23  ;;  %vm336_vm0 = vweird.f32 %v315_v18 }
  0xd5   :  { %v291_v27 = vsub.f32 %v191_v21, %v275_v22  ;;  %v340_v41 = vand.u32 2147483647, %v315_v18  ;;  %v342_v45 = vand.u32 2147483648, %v315_v18 }
  0xd6   :  { %v304_v29 = vadd.f32 %v1380_v14, %v284_v25  ;;  %v280_v30 = vsub.f32 %v169_v24, %v264_v26 }
  0xd7   :  { %v311_v31 = vadd.f32 %v1380_v14, %v291_v27  ;;  %vm1403_vm2 = vcmp.eq.f32.partialorder %v340_v41, 8.507059e+37  ;;  %v343_v61 = vor.u32 1.1754944e-38, %v342_v45 }
  0xd8   :  { %v1385_v32 = vmax.f32 %v304_v29, 1e-06  ;;  %v300_v33 = vadd.f32 %v1380_v14, %v280_v30 }
  0xd9   :  { %v1388_v34 = vmax.f32 %v311_v31, 1e-06  ;;  %v233_v35 = vpop.f32.mrf.mxu2 }
  0xda   :  { %v1133_v37 = vpop.eup %1132  ;;  %1134 = vrcp.f32 %v1385_v32  ;;  %v1394_v38 = vmax.f32 %v300_v33, 1e-06  ;;  %v269_v39 = vmul.f32 2.0, %v233_v35  ;;  %v254_v40 = vpop.f32.mrf.mxu3  ;;  %v415_v50 = vand.u32 2147483647, %v1385_v32 }
  0xdb   :  { %1136 = vrcp.f32 %v1388_v34  ;;  %v276_v42 = vmul.f32 2.0, %v254_v40  ;;  %v221_v43 = vpop.f32.mrf.mxu0  ;;  %v332_v44 = vmul.f32 %v1133_v37, %v315_v18  ;;  %vm337_vm1 = vweird.f32 %v1133_v37 }
  0xdc   :  { %1138 = vrcp.f32 %v1394_v38  ;;  %v285_v46 = vsub.f32 %v1367_v60, %v269_v39  ;;  %v265_v47 = vmul.f32 2.0, %v221_v43  ;;  %v417_v53 = vand.u32 2147483648, %v1385_v32  ;;  %vm1415_vm4 = vmor %vm336_vm0, %vm337_vm1 }
  0xdd   :  { %v292_v48 = vsub.f32 %v193_v10, %v276_v42  ;;  %v333_v49 = vsub.f32 1.0, %v332_v44  ;;  %v355_v62 = vand.u32 2147483647, %v1394_v38  ;;  %vm411_vm5 = vweird.f32 %v1385_v32 }
  0xde   :  { %v305_v55 = vadd.f32 %v1380_v14, %v285_v46  ;;  %v281_v56 = vsub.f32 %v1359_v51, %v265_v47  ;;  %vm351_vm6 = vweird.f32 %v1394_v38  ;;  %vm1424_vm7 = vcmp.eq.f32.partialorder %v415_v50, 8.507059e+37 }
  0xdf   :  { %v312_v59 = vadd.f32 %v1380_v14, %v292_v48  ;;  %v334_v60 = vmul.f32 %v1133_v37, %v333_v49  ;;  %v418_v11 = vor.u32 1.1754944e-38, %v417_v53  ;;  %v357_v12 = vand.u32 2147483648, %v1394_v38  ;;  %v197_v53 = vpop.xlane.xlu2 %196 }
  0xe0   :  { %v1135_v63 = vpop.eup %1134  ;;  %v1410_v0 = vmax.f32 %v305_v55, 1e-06  ;;  %v301_v1 = vadd.f32 %v1380_v14, %v281_v56  ;;  %vm516_vm9 = vweird.f32 %v1388_v34  ;;  %vm1437_vm10 = vcmp.eq.f32.partialorder %v355_v62, 8.507059e+37 }
  0xe1   :  { %v1421_v3 = vpop.eup %1136  ;;  %v236_v5 = vpop.f32.mrf.mxu2  ;;  %v335_v7 = vadd.f32 %v1133_v37, %v334_v60  ;;  %v407_v8 = vmul.f32 %v1135_v63, %v1385_v32  ;;  %v1431_v15 = vmax.f32 %v312_v59, 1e-06  ;;  %vm412_vm8 = vweird.f32 %v1135_v63 }
  0xe2   :  { %v1429_v13 = vpop.eup %1138  ;;  %v270_v16 = vmul.f32 2.0, %v236_v5  ;;  %v257_v17 = vpop.f32.mrf.mxu3  ;;  %1140 = vrcp.f32 %v1410_v0  ;;  %v1441_v23 = vmax.f32 %v301_v1, 1e-06  ;;  %vm413_vm12 = vmor %vm411_vm5, %vm412_vm8  ;;  %v358_v41 = vor.u32 1.1754944e-38, %v357_v12 }
  0xe3   :  { %v277_v18 = vmul.f32 2.0, %v257_v17  ;;  %v224_v19 = vpop.f32.mrf.mxu0  ;;  %v339_v20 = vsel %vm1415_vm4, %v1133_v37, %v335_v7  ;;  %v408_v21 = vsub.f32 1.0, %v407_v8  ;;  %v347_v31 = vmul.f32 %v1429_v13, %v1394_v38 }
  0xe4   :  { %v286_v24 = vsub.f32 %v1371_v4, %v270_v16  ;;  %v266_v25 = vmul.f32 2.0, %v224_v19  ;;  %v344_v26 = vsel %vm1403_vm2, %v343_v61, %v339_v20  ;;  %1142 = vrcp.f32 %v1431_v15 }
  0xe5   :  { %v293_v27 = vsub.f32 %v1375_v9, %v277_v18  ;;  %1040 = vmatmul.msk.f32.vlgmr.msrb.gmra.mxu0 %vm576_vm3, %v344_v26  ;;  %v579_v29 = vsel %vm576_vm3, %v344_v26, 0.0  ;;  %v409_v30 = vmul.f32 %v1135_v63, %v408_v21  ;;  %v512_v9 = vmul.f32 %v1421_v3, %v1388_v34 }
  0xe6   :  { %v306_v4 = vadd.f32 %v1380_v14, %v286_v24  ;;  %v282_v33 = vsub.f32 %v1361_v52, %v266_v25  ;;  %611 = vadd.xlane.f32.xlu1 %v579_v29  ;;  %v348_v39 = vsub.f32 1.0, %v347_v31  ;;  %vm352_vm11 = vweird.f32 %v1429_v13 }
  0xe7   :  { %v313_v35 = vadd.f32 %v1380_v14, %v293_v27  ;;  %v410_v37 = vadd.f32 %v1135_v63, %v409_v30  ;;  %1144 = vrcp.f32 %v1441_v23  ;;  %v513_v52 = vsub.f32 1.0, %v512_v9  ;;  %vm1480_vm13 = vmor %vm351_vm6, %vm352_vm11 }
  0xe8   :  { %v302_v40 = vadd.f32 %v1380_v14, %v282_v33  ;;  %v1465_v42 = vpop.eup %1140  ;;  %v349_v45 = vmul.f32 %v1429_v13, %v348_v39  ;;  %v520_v46 = vand.u32 2147483647, %v1388_v34  ;;  %v522_v47 = vand.u32 2147483648, %v1388_v34 }
  0xe9   :  { %v239_v43 = vpop.f32.mrf.mxu2  ;;  %v414_v44 = vsel %vm413_vm12, %v1135_v63, %v410_v37  ;;  %v1470_v48 = vmax.f32 %v306_v4, 1e-06  ;;  %vm517_vm14 = vweird.f32 %v1421_v3  ;;  %v1485_v56 = vmax.f32 %v313_v35, 1e-06 }
  0xea   :  { %v271_v49 = vmul.f32 2.0, %v239_v43  ;;  %v260_v50 = vpop.f32.mrf.mxu3  ;;  %v1474_v32 = vsel %vm1424_vm7, %v418_v11, %v414_v44  ;;  %v350_v61 = vadd.f32 %v1429_v13, %v349_v45  ;;  %v1143_v62 = vpop.eup %1142  ;;  %v1491_v63 = vmax.f32 %v302_v40, 1e-06  ;;  %vm1500_vm15 = vmor %vm516_vm9, %vm517_vm14 }
  0xeb   :  { %v227_v57 = vpop.f32.mrf.mxu0  ;;  %v278_v59 = vmul.f32 2.0, %v260_v50  ;;  %v584_v60 = vsel %vm576_vm3, %v1474_v32, 0.0  ;;  %v514_v51 = vmul.f32 %v1421_v3, %v513_v52  ;;  %vm1504_vm0 = vcmp.eq.f32.partialorder %v520_v46, 8.507059e+37 }
  0xec   :  { %v287_v38 = vsub.f32 %v1365_v58, %v271_v49  ;;  %v267_v1 = vmul.f32 2.0, %v227_v57  ;;  %621 = vadd.xlane.f32.xlu0 %v584_v60  ;;  %v354_v7 = vsel %vm1480_vm13, %v1429_v13, %v350_v61  ;;  %v523_v58 = vor.u32 1.1754944e-38, %v522_v47 }
  0xed   :  { %v294_v5 = vsub.f32 %v197_v53, %v278_v59  ;;  %v1508_v11 = vpop.eup %1144  ;;  %v359_v13 = vsel %vm1437_vm10, %v358_v41, %v354_v7  ;;  %v515_v34 = vadd.f32 %v1421_v3, %v514_v51  ;;  %1146 = vrcp.f32 %v1470_v48 }
  0xee   :  { %v307_v12 = vadd.f32 %v1380_v14, %v287_v38  ;;  %v283_v16 = vsub.f32 %v1363_v54, %v267_v1  ;;  %1041 = vmatmul.msk.f32.gmra.mxu0 %vm576_vm3, %v359_v13  ;;  %v580_v18 = vsel %vm576_vm3, %v359_v13, 0.0  ;;  %v527_v19 = vmul.f32 %v1143_v62, %v1431_v15 }
  0xef   :  { %v314_v17 = vadd.f32 %v1380_v14, %v294_v5  ;;  %1148 = vrcp.f32 %v1485_v56  ;;  %613 = vadd.xlane.f32.xlu2 %v580_v18  ;;  %v519_v21 = vsel %vm1500_vm15, %v1421_v3, %v515_v34  ;;  %v535_v27 = vand.u32 2147483647, %v1431_v15 }
  0xf0   :  { %v1523_v54 = vmax.f32 %v307_v12, 1e-06  ;;  %v303_v20 = vadd.f32 %v1380_v14, %v283_v16  ;;  %v1533_v24 = vsel %vm1504_vm0, %v523_v58, %v519_v21  ;;  %v528_v26 = vsub.f32 1.0, %v527_v19 }
  0xf1   :  { %v1529_v22 = vmax.f32 %v314_v17, 1e-06  ;;  %v242_v25 = vpop.f32.mrf.mxu2  ;;  %1150 = vrcp.f32 %v1491_v63  ;;  %v591_v30 = vsel %vm576_vm3, %v1533_v24, 0.0  ;;  %vm532_vm1 = vweird.f32 %v1143_v62 }
  0xf2   :  { %v1537_v29 = vmax.f32 %v303_v20, 1e-06  ;;  %v272_v31 = vmul.f32 2.0, %v242_v25  ;;  %1152 = vrcp.f32 %v1523_v54  ;;  %635 = vadd.xlane.f32.xlu1 %v591_v30  ;;  %v529_v3 = vmul.f32 %v1143_v62, %v528_v26 }
  0xf3   :  { %v537_v4 = vand.u32 2147483648, %v1431_v15  ;;  %1154 = vrcp.f32 %v1529_v22  ;;  %vm531_vm2 = vweird.f32 %v1431_v15  ;;  %v362_v9 = vmul.f32 %v1508_v11, %v1441_v23  ;;  %v1549_v35 = vpop.eup %1146 }
  0xf4   :  { %v288_v33 = vsub.f32 %v1373_v6, %v272_v31  ;;  %1156 = vrcp.f32 %v1537_v29  ;;  %v530_v37 = vadd.f32 %v1143_v62, %v529_v3  ;;  %vm536_vm4 = vcmp.eq.f32.partialorder %v535_v27, 8.507059e+37  ;;  %vm533_vm5 = vmor %vm531_vm2, %vm532_vm1 }
  0xf5   :  { %v370_v39 = vand.u32 2147483647, %v1441_v23  ;;  %v1553_v40 = vpop.eup %1148  ;;  %v538_v52 = vor.u32 1.1754944e-38, %v537_v4  ;;  %v363_v6 = vsub.f32 1.0, %v362_v9  ;;  %v422_v15 = vmul.f32 %v1465_v42, %v1410_v0 }
  0xf6   :  { %v308_v41 = vadd.f32 %v1380_v14, %v288_v33  ;;  %v534_v43 = vsel %vm533_vm5, %v1143_v62, %v530_v37  ;;  %vm366_vm6 = vweird.f32 %v1441_v23  ;;  %vm367_vm7 = vweird.f32 %v1508_v11 }
  0xf7   :  { %v372_v44 = vand.u32 2147483648, %v1441_v23  ;;  %v1561_v45 = vpop.eup %1150  ;;  %v539_v46 = vsel %vm536_vm4, %v538_v52, %v534_v43  ;;  %v364_v47 = vmul.f32 %v1508_v11, %v363_v6  ;;  %vm1564_vm8 = vcmp.eq.f32.partialorder %v370_v39, 8.507059e+37  ;;  %vm368_vm11 = vmor %vm366_vm6, %vm367_vm7  ;;  %v189_v52 = vpop.xlane.xlu1 %188 }
  0xf8   :  { %vm426_vm9 = vweird.f32 %v1410_v0  ;;  %v1569_v50 = vpop.eup %1152  ;;  %1053 = vmatmul.msk.f32.vlgmr.msrb.gmra.mxu3 %vm576_vm3, %v539_v46  ;;  %v592_v53 = vsel %vm576_vm3, %v539_v46, 0.0  ;;  %v423_v55 = vsub.f32 1.0, %v422_v15  ;;  %vm427_vm10 = vweird.f32 %v1465_v42 }
  0xf9   :  { %v432_v57 = vand.u32 2147483648, %v1410_v0  ;;  %v245_v59 = vpop.f32.mrf.mxu2  ;;  %v1577_v60 = vpop.eup %1154  ;;  %v1579_v61 = vmax.f32 %v308_v41, 1e-06  ;;  %v365_v62 = vadd.f32 %v1508_v11, %v364_v47  ;;  %637 = vadd.xlane.f32.xlu2 %v592_v53  ;;  %v542_v1 = vmul.f32 %v1553_v40, %v1485_v56  ;;  %vm428_vm13 = vmor %vm426_vm9, %vm427_vm10 }
  0xfa   :  { %v273_v38 = vmul.f32 2.0, %v245_v59  ;;  %v1584_v51 = vpop.eup %1156  ;;  %v373_v5 = vor.u32 1.1754944e-38, %v372_v44  ;;  %v424_v7 = vmul.f32 %v1465_v42, %v423_v55  ;;  %v430_v8 = vand.u32 2147483647, %v1410_v0 }
  0xfb   :  { %v433_v10 = vor.u32 1.1754944e-38, %v432_v57  ;;  %v369_v58 = vsel %vm368_vm11, %v1508_v11, %v365_v62  ;;  %v543_v16 = vsub.f32 1.0, %v542_v1  ;;  %vm546_vm12 = vweird.f32 %v1485_v56 }
  0xfc   :  { %v289_v12 = vsub.f32 %v1369_v2, %v273_v38  ;;  %v374_v13 = vsel %vm1564_vm8, %v373_v5, %v369_v58  ;;  %v425_v34 = vadd.f32 %v1465_v42, %v424_v7  ;;  %v550_v23 = vand.u32 2147483647, %v1485_v56 }
  0xfd   :  { %v552_v17 = vand.u32 2147483648, %v1485_v56  ;;  %1042 = vmatmul.msk.f32.vlgmr.msra.gmra.mxu1 %vm576_vm3, %v374_v13  ;;  %v581_v11 = vsel %vm576_vm3, %v374_v13, 0.0  ;;  %v544_v2 = vmul.f32 %v1553_v40, %v543_v16  ;;  %vm547_vm14 = vweird.f32 %v1553_v40 }
  0xfe   :  { %v377_v18 = vmul.f32 %v1561_v45, %v1491_v63  ;;  %1158 = vrcp.f32 %v1579_v61  ;;  %615 = vadd.xlane.f32.xlu0 %v581_v11  ;;  %v429_v19 = vsel %vm428_vm13, %v1465_v42, %v425_v34  ;;  %vm431_vm15 = vcmp.eq.f32.partialorder %v430_v8, 8.507059e+37  ;;  %vm548_vm1 = vmor %vm546_vm12, %vm547_vm14 }
  0xff   :  { %v309_v20 = vadd.f32 %v1380_v14, %v289_v12  ;;  %v1615_v21 = vsel %vm431_vm15, %v433_v10, %v429_v19  ;;  %v545_v0 = vadd.f32 %v1553_v40, %v544_v2  ;;  %vm551_vm0 = vcmp.eq.f32.partialorder %v550_v23, 8.507059e+37 }
 0x100   :  { %v378_v25 = vsub.f32 1.0, %v377_v18  ;;  %v585_v26 = vsel %vm576_vm3, %v1615_v21, 0.0  ;;  %v553_v27 = vor.u32 1.1754944e-38, %v552_v17  ;;  %v385_v30 = vand.u32 2147483647, %v1491_v63 }
 0x101   :  { %v387_v42 = vand.u32 2147483648, %v1491_v63  ;;  %623 = vadd.xlane.f32.xlu1 %v585_v26  ;;  %v549_v31 = vsel %vm548_vm1, %v1553_v40, %v545_v0  ;;  %vm382_vm2 = vweird.f32 %v1561_v45  ;;  %v437_v4 = vmul.f32 %v1549_v35, %v1470_v48  ;;  %v248_v33 = vpop.f32.mrf.mxu2 }
 0x102   :  { %v379_v3 = vmul.f32 %v1561_v45, %v378_v25  ;;  %v1630_v9 = vmax.f32 %v309_v20, 1e-06  ;;  %v554_v56 = vsel %vm551_vm0, %v553_v27, %v549_v31  ;;  %vm381_vm4 = vweird.f32 %v1491_v63 }
 0x103   :  { %vm1633_vm5 = vcmp.eq.f32.partialorder %v385_v30, 8.507059e+37  ;;  %1054 = vmatmul.msk.f32.gmra.mxu3 %vm576_vm3, %v554_v56  ;;  %v388_v40 = vor.u32 1.1754944e-38, %v387_v42  ;;  %v438_v41 = vsub.f32 1.0, %v437_v4  ;;  %vm441_vm6 = vweird.f32 %v1470_v48  ;;  %vm383_vm7 = vmor %vm381_vm4, %vm382_vm2 }
 0x104   :  { %v380_v39 = vadd.f32 %v1561_v45, %v379_v3  ;;  %v1641_v6 = vpop.eup %1158  ;;  %vm442_vm8 = vweird.f32 %v1549_v35  ;;  %v447_v63 = vand.u32 2147483648, %v1470_v48  ;;  %v274_v15 = vmul.f32 2.0, %v248_v33 }
 0x105   :  { %v392_v43 = vmul.f32 %v1584_v51, %v1537_v29  ;;  %v439_v46 = vmul.f32 %v1549_v35, %v438_v41  ;;  %v445_v47 = vand.u32 2147483647, %v1470_v48  ;;  %v593_v49 = vsel %vm576_vm3, %v554_v56, 0.0  ;;  %vm443_vm10 = vmor %vm441_vm6, %vm442_vm8 }
 0x106   :  { %v384_v44 = vsel %vm383_vm7, %v1561_v45, %v380_v39  ;;  %v448_v55 = vor.u32 1.1754944e-38, %v447_v63  ;;  %639 = vadd.xlane.f32.xlu0 %v593_v49  ;;  %v290_v57 = vsub.f32 %v189_v52, %v274_v15  ;;  %vm397_vm9 = vweird.f32 %v1584_v51 }
 0x107   :  { %v389_v53 = vsel %vm1633_vm5, %v388_v40, %v384_v44  ;;  %v393_v59 = vsub.f32 1.0, %v392_v43  ;;  %v440_v62 = vadd.f32 %v1549_v35, %v439_v46  ;;  %v400_v38 = vand.u32 2147483647, %v1537_v29 }
 0x108   :  { %1043 = vmatmul.msk.f32.gmra.mxu1 %vm576_vm3, %v389_v53  ;;  %v582_v45 = vsel %vm576_vm3, %v389_v53, 0.0  ;;  %v310_v1 = vadd.f32 %v1380_v14, %v290_v57  ;;  %v402_v7 = vand.u32 2147483648, %v1537_v29  ;;  %v452_v8 = vmul.f32 %v1569_v50, %v1523_v54 }
 0x109   :  { %v394_v5 = vmul.f32 %v1584_v51, %v393_v59  ;;  %1160 = vrcp.f32 %v1630_v9  ;;  %v444_v10 = vsel %vm443_vm10, %v1549_v35, %v440_v62  ;;  %vm446_vm11 = vcmp.eq.f32.partialorder %v445_v47, 8.507059e+37  ;;  %617 = vadd.xlane.f32.xlu1 %v582_v45 }
 0x10a   :  { %vm396_vm12 = vweird.f32 %v1537_v29  ;;  %v1673_v58 = vsel %vm446_vm11, %v448_v55, %v444_v10  ;;  %v1675_v48 = vmax.f32 %v310_v1, 1e-06  ;;  %vm401_vm13 = vcmp.eq.f32.partialorder %v400_v38, 8.507059e+37 }
 0x10b   :  { %v395_v14 = vadd.f32 %v1584_v51, %v394_v5  ;;  %v586_v12 = vsel %vm576_vm3, %v1673_v58, 0.0  ;;  %vm398_vm14 = vmor %vm396_vm12, %vm397_vm9  ;;  %v403_v16 = vor.u32 1.1754944e-38, %v402_v7  ;;  %v453_v35 = vsub.f32 1.0, %v452_v8 }
 0x10c   :  { %v460_v13 = vand.u32 2147483647, %v1523_v54  ;;  %625 = vadd.xlane.f32.xlu2 %v586_v12  ;;  %1162 = vrcp.f32 %v1675_v48  ;;  %v462_v34 = vand.u32 2147483648, %v1523_v54  ;;  %v557_v23 = vmul.f32 %v1577_v60, %v1529_v22 }
 0x10d   :  { %v399_v29 = vsel %vm398_vm14, %v1584_v51, %v395_v14  ;;  %v454_v11 = vmul.f32 %v1569_v50, %v453_v35  ;;  %vm457_vm15 = vweird.f32 %v1569_v50  ;;  %vm561_vm0 = vweird.f32 %v1529_v22 }
 0x10e   :  { %v404_v17 = vsel %vm401_vm13, %v403_v16, %v399_v29  ;;  %v558_v2 = vsub.f32 1.0, %v557_v23  ;;  %vm562_vm1 = vweird.f32 %v1577_v60  ;;  %v565_v18 = vand.u32 2147483647, %v1529_v22 }
 0x10f   :  { %v1161_v19 = vpop.eup %1160  ;;  %v455_v51 = vadd.f32 %v1569_v50, %v454_v11  ;;  %vm456_vm2 = vweird.f32 %v1523_v54  ;;  %v567_v20 = vand.u32 2147483648, %v1529_v22  ;;  %v467_v0 = vmul.f32 %v1641_v6, %v1579_v61  ;;  %vm1707_vm6 = vmor %vm561_vm0, %vm562_vm1 }
 0x110   :  { %1044 = vmatmul.msk.f32.gmra.mxu1 %vm576_vm3, %v404_v17  ;;  %vm458_vm4 = vmor %vm456_vm2, %vm457_vm15  ;;  %vm461_vm5 = vcmp.eq.f32.partialorder %v460_v13, 8.507059e+37  ;;  %v463_v25 = vor.u32 1.1754944e-38, %v462_v34  ;;  %v559_v26 = vmul.f32 %v1577_v60, %v558_v2  ;;  %v583_v30 = vsel %vm576_vm3, %v404_v17, 0.0 }
 0x111   :  { %v459_v27 = vsel %vm458_vm4, %v1569_v50, %v455_v51  ;;  %v568_v54 = vor.u32 1.1754944e-38, %v567_v20  ;;  %v468_v31 = vsub.f32 1.0, %v467_v0  ;;  %vm566_vm7 = vcmp.eq.f32.partialorder %v565_v18, 8.507059e+37 }
 0x112   :  { %v1163_v3 = vpop.eup %1162  ;;  %v464_v4 = vsel %vm461_vm5, %v463_v25, %v459_v27  ;;  %v560_v33 = vadd.f32 %v1577_v60, %v559_v26  ;;  %v482_v56 = vmul.f32 %v1161_v19, %v1630_v9  ;;  %vm471_vm8 = vweird.f32 %v1579_v61 }
 0x113   :  { %v587_v50 = vsel %vm576_vm3, %v464_v4, 0.0  ;;  %v469_v37 = vmul.f32 %v1641_v6, %v468_v31  ;;  %v477_v22 = vand.u32 2147483648, %v1579_v61  ;;  %vm472_vm9 = vweird.f32 %v1641_v6 }
 0x114   :  { %627 = vadd.xlane.f32.xlu0 %v587_v50  ;;  %619 = vadd.xlane.f32.xlu2 %v583_v30  ;;  %v564_v39 = vsel %vm1707_vm6, %v1577_v60, %v560_v33  ;;  %v475_v40 = vand.u32 2147483647, %v1579_v61  ;;  %v483_v41 = vsub.f32 1.0, %v482_v56  ;;  %v492_v15 = vand.u32 2147483648, %v1630_v9  ;;  %vm1736_vm11 = vmor %vm471_vm8, %vm472_vm9 }
 0x115   :  { %v569_v52 = vsel %vm566_vm7, %v568_v54, %v564_v39  ;;  %v470_v63 = vadd.f32 %v1641_v6, %v469_v37  ;;  %v497_v43 = vmul.f32 %v1163_v3, %v1675_v48  ;;  %vm487_vm10 = vweird.f32 %v1161_v19 }
 0x116   :  { %v594_v44 = vsel %vm576_vm3, %v569_v52, 0.0  ;;  %v484_v46 = vmul.f32 %v1161_v19, %v483_v41  ;;  %v490_v47 = vand.u32 2147483647, %v1630_v9  ;;  %1055 = vmatmul.msk.f32.gmra.mxu3 %vm576_vm3, %v569_v52  ;;  %v478_v49 = vor.u32 1.1754944e-38, %v477_v22 }
 0x117   :  { %641 = vadd.xlane.f32.xlu1 %v594_v44  ;;  %v498_v53 = vsub.f32 1.0, %v497_v43  ;;  %v474_v55 = vsel %vm1736_vm11, %v1641_v6, %v470_v63  ;;  %vm486_vm12 = vweird.f32 %v1630_v9  ;;  %v507_v59 = vand.u32 2147483648, %v1675_v48 }
 0x118   :  { %1045 = vmatmul.msk.f32.gmra.mxu1 %vm576_vm3, %v1474_v32  ;;  %v485_v57 = vadd.f32 %v1161_v19, %v484_v46  ;;  %vm488_vm13 = vmor %vm486_vm12, %vm487_vm10  ;;  %v493_v62 = vor.u32 1.1754944e-38, %v492_v15  ;;  %vm502_vm14 = vweird.f32 %v1163_v3  ;;  %v505_v61 = vand.u32 2147483647, %v1675_v48 }
 0x119   :  { %v499_v32 = vmul.f32 %v1163_v3, %v498_v53  ;;  %vm476_vm15 = vcmp.eq.f32.partialorder %v475_v40, 8.507059e+37  ;;  %vm491_vm0 = vcmp.eq.f32.partialorder %v490_v47, 8.507059e+37  ;;  %vm501_vm1 = vweird.f32 %v1675_v48 }
 0x11a   :  { %v489_v45 = vsel %vm488_vm13, %v1161_v19, %v485_v57  ;;  %v479_v38 = vsel %vm476_vm15, %v478_v49, %v474_v55  ;;  %vm503_vm2 = vmor %vm501_vm1, %vm502_vm14  ;;  %v508_v9 = vor.u32 1.1754944e-38, %v507_v59  ;;  %vm506_vm4 = vcmp.eq.f32.partialorder %v505_v61, 8.507059e+37 }
 0x11b   :  { %v494_v1 = vsel %vm491_vm0, %v493_v62, %v489_v45  ;;  %v500_v5 = vadd.f32 %v1163_v3, %v499_v32  ;;  %v588_v8 = vsel %vm576_vm3, %v479_v38, 0.0  ;;  %vm85_vm5 = vcmask 7168  }
 0x11c   :  { %v589_v6 = vsel %vm576_vm3, %v494_v1, 0.0  ;;  %v1273_v14 = vmov 0.0  }
 0x11d   :  { %631 = vadd.xlane.f32.xlu2 %v589_v6  ;;  %v504_v7 = vsel %vm503_vm2, %v1163_v3, %v500_v5  ;;  %86 = vst.msk [vmem:[#allocation2] sm:$0xff] %vm85_vm5, %v1273_v14 }
 0x11e   :  { %v509_v10 = vsel %vm506_vm4, %v508_v9, %v504_v7  ;;  %87 = vst.msk [vmem:[#allocation2 + $0x8] sm:$0xff] %vm85_vm5, %v1273_v14 }
 0x11f   :  { %629 = vadd.xlane.f32.xlu1 %v588_v8  ;;  %v590_v48 = vsel %vm576_vm3, %v509_v10, 0.0  ;;  %88 = vst.msk [vmem:[#allocation2 + $0x10] sm:$0xff] %vm85_vm5, %v1273_v14 }
 0x120   :  { %1046 = vmatmul.msk.f32.gmra.mxu1 %vm576_vm3, %v1615_v21  ;;  %633 = vadd.xlane.f32.xlu0 %v590_v48  ;;  %89 = vst.msk [vmem:[#allocation2 + $0x18] sm:$0xff] %vm85_vm5, %v1273_v14  ;;  %v1274_v21 = vmov 0  }
 0x121   :  { %90 = vst.msk [vmem:[#allocation2 + $0x20] sm:$0xff] %vm85_vm5, %v1273_v14  ;;  %1128 = vset.pattern.permute.xlu2 %v1274_v21  ;;  %1130 = vset.pattern.permute.xlu1 %v1274_v21 }
 0x122   :  { %91 = vst.msk [vmem:[#allocation2 + $0x28] sm:$0xff] %vm85_vm5, %v1273_v14  ;;  %1129 = vset.pattern.permute.xlu0 %v1274_v21 }
 0x123   :  { %92 = vst.msk [vmem:[#allocation2 + $0x30] sm:$0xff] %vm85_vm5, %v1273_v14 }
 0x124   :  { %93 = vst.msk [vmem:[#allocation2 + $0x38] sm:$0xff] %vm85_vm5, %v1273_v14 }
 0x125   :  { %94 = vst.msk [vmem:[#allocation2 + $0x40] sm:$0xff] %vm85_vm5, %v1273_v14  ;;  %v596_v34 = vld [vmem:[#allocation2 + $0x8] sm:$0xff] }
 0x126   :  { %95 = vst.msk [vmem:[#allocation2 + $0x48] sm:$0xff] %vm85_vm5, %v1273_v14  ;;  %v597_v26 = vld [vmem:[#allocation2 + $0x10] sm:$0xff] }
 0x127   :  { %96 = vst.msk [vmem:[#allocation2 + $0x50] sm:$0xff] %vm85_vm5, %v1273_v14  ;;  %v598_v56 = vld [vmem:[#allocation2 + $0x18] sm:$0xff] }
 0x128   :  { %1047 = vmatmul.msk.f32.gmra.mxu1 %vm576_vm3, %v1673_v58  ;;  %97 = vst.msk [vmem:[#allocation2 + $0x58] sm:$0xff] %vm85_vm5, %v1273_v14  ;;  %v595_v58 = vld [vmem:[#allocation2] sm:$0xff] }
 0x129   :  { %98 = vst.msk [vmem:[#allocation2 + $0x60] sm:$0xff] %vm85_vm5, %v1273_v14  ;;  %v600_v35 = vld [vmem:[#allocation2 + $0x28] sm:$0xff]  ;;  %v599_v15 = vld [vmem:[#allocation2 + $0x20] sm:$0xff] }
 0x12a   :  { %99 = vst.msk [vmem:[#allocation2 + $0x68] sm:$0xff] %vm85_vm5, %v1273_v14  ;;  %v601_v42 = vld [vmem:[#allocation2 + $0x30] sm:$0xff] }
 0x12b   :  { %100 = vst.msk [vmem:[#allocation2 + $0x70] sm:$0xff] %vm85_vm5, %v1273_v14  ;;  %v602_v22 = vld [vmem:[#allocation2 + $0x38] sm:$0xff] }
 0x12c   :  { %101 = vst.msk [vmem:[#allocation2 + $0x78] sm:$0xff] %vm85_vm5, %v1273_v14  ;;  %v603_v63 = vld [vmem:[#allocation2 + $0x40] sm:$0xff] }
 0x12d   :  { %v604_v62 = vld [vmem:[#allocation2 + $0x48] sm:$0xff] }
 0x12e   :  { %v605_v59 = vld [vmem:[#allocation2 + $0x50] sm:$0xff] }
 0x130   :  { %1048 = vmatmul.msk.f32.gmra.mxu1 %vm576_vm3, %v464_v4  ;;  %v607_v2 = vld [vmem:[#allocation2 + $0x60] sm:$0xff] }
 0x131   :  { %v608_v51 = vld [vmem:[#allocation2 + $0x68] sm:$0xff] }
 0x132   :  { %v609_v3 = vld [vmem:[#allocation2 + $0x70] sm:$0xff] }
 0x133   :  { %v610_v49 = vld [vmem:[#allocation2 + $0x78] sm:$0xff] }
 0x138   :  { %1049 = vmatmul.msk.f32.gmra.mxu1 %vm576_vm3, %v479_v38  ;;  %v606_v38 = vld [vmem:[#allocation2 + $0x58] sm:$0xff] }
 0x140   :  { %1050 = vmatmul.msk.f32.gmra.mxu1 %vm576_vm3, %v494_v1 }
 0x148   :  { %1051 = vmatmul.msk.f32.gmra.mxu1 %vm576_vm3, %v509_v10 }
 0x150   :  { %1052 = vmatmul.msk.f32.gmra.mxu1 %vm576_vm3, %v1533_v24 }
 0x159   :  { %v612_v12 = vpop.xlane.xlu1 %611 }
 0x15a   :  { %v643_v16 = vadd.f32 %v612_v12, %v595_v58 }
 0x15c   :  { %660 = vst.msk [vmem:[#allocation2] sm:$0xff] %vm85_vm5, %v643_v16 }
 0x15f   :  { %v622_v13 = vpop.xlane.xlu0 %621 }
 0x160   :  { %v648_v29 = vadd.f32 %v622_v13, %v600_v35 }
 0x162   :  { %665 = vst.msk [vmem:[#allocation2 + $0x28] sm:$0xff] %vm85_vm5, %v648_v29  ;;  %v614_v23 = vpop.xlane.xlu2 %613 }
 0x163   :  { %v825_v17 = vld [vmem:[#allocation2] sm:$0xff]  ;;  %v644_v11 = vadd.f32 %v614_v23, %v596_v34  ;;  %v1807_v34 = vshrl.u32 %v572_v28, 7 }
 0x164   :  { %843 = vperm.xlu2 %1128, %v825_v17  }
 0x165   :  { %661 = vst.msk [vmem:[#allocation2 + $0x8] sm:$0xff] %vm85_vm5, %v644_v11  ;;  %v636_v18 = vpop.xlane.xlu1 %635  ;;  %v794_v17 = vadd.s32 8, %v1807_v34  ;;  %v795_v11 = vadd.s32 16, %v1807_v34  ;;  %vm809_vm6 = vcmp.eq.s32.totalorder %v1807_v34, %v1391_v36  ;;  %v796_v28 = vadd.s32 24, %v1807_v34 }
 0x166   :  { %v655_v24 = vadd.f32 %v636_v18, %v607_v2 }
 0x167   :  { %vm810_vm3 = vcmp.eq.s32.totalorder %v794_v17, %v1391_v36  ;;  %vm811_vm7 = vcmp.eq.s32.totalorder %v795_v11, %v1391_v36  ;;  %vm812_vm8 = vcmp.eq.s32.totalorder %v796_v28, %v1391_v36 }
 0x168   :  { %672 = vst.msk [vmem:[#allocation2 + $0x60] sm:$0xff] %vm85_vm5, %v655_v24 }
 0x169   :  { %v830_v19 = vld [vmem:[#allocation2 + $0x28] sm:$0xff] }
 0x16a   :  { %868 = vperm.xlu1 %1130, %v830_v19  }
 0x16c   :  { %v638_v20 = vpop.xlane.xlu2 %637  ;;  %v826_v0 = vld [vmem:[#allocation2 + $0x8] sm:$0xff] }
 0x16d   :  { %v656_v25 = vadd.f32 %v638_v20, %v608_v51  ;;  %848 = vperm.xlu0 %1129, %v826_v0  }
 0x16f   :  { %673 = vst.msk [vmem:[#allocation2 + $0x68] sm:$0xff] %vm85_vm5, %v656_v25  ;;  %v837_v21 = vld [vmem:[#allocation2 + $0x60] sm:$0xff] }
 0x171   :  { %v616_v27 = vpop.xlane.xlu0 %615 }
 0x172   :  { %v645_v30 = vadd.f32 %v616_v27, %v597_v26  ;;  %v797_v26 = vadd.s32 32, %v1807_v34 }
 0x174   :  { %662 = vst.msk [vmem:[#allocation2 + $0x10] sm:$0xff] %vm85_vm5, %v645_v30  ;;  %v624_v54 = vpop.xlane.xlu1 %623  ;;  %vm813_vm9 = vcmp.eq.s32.totalorder %v797_v26, %v1391_v36  ;;  %v709_v26 = vpop.f32.mrf.mxu0 }
 0x175   :  { %v649_v31 = vadd.f32 %v624_v54, %v601_v42  ;;  %v798_v42 = vadd.s32 40, %v1807_v34 }
 0x176   :  { %v838_v14 = vld [vmem:[#allocation2 + $0x68] sm:$0xff] }
 0x177   :  { %666 = vst.msk [vmem:[#allocation2 + $0x30] sm:$0xff] %vm85_vm5, %v649_v31  ;;  %vm814_vm10 = vcmp.eq.s32.totalorder %v798_v42, %v1391_v36 }
 0x179   :  { %v640_v4 = vpop.xlane.xlu0 %639 }
 0x17a   :  { %v657_v33 = vadd.f32 %v640_v4, %v609_v3  ;;  %v1802_v16 = vpop.f32.mrf.mxu1 }
 0x17b   :  { %v827_v50 = vld [vmem:[#allocation2 + $0x10] sm:$0xff]  ;;  %v748_v42 = vpop.f32.mrf.mxu3 }
 0x17c   :  { %674 = vst.msk [vmem:[#allocation2 + $0x70] sm:$0xff] %vm85_vm5, %v657_v33  ;;  %v618_v37 = vpop.xlane.xlu1 %617  ;;  %853 = vperm.xlu1 %1130, %v827_v50   ;;  %v799_v33 = vadd.s32 48, %v1807_v34 }
 0x17d   :  { %v646_v39 = vadd.f32 %v618_v37, %v598_v56  ;;  %v800_v37 = vadd.s32 56, %v1807_v34 }
 0x17e   :  { %v831_v40 = vld [vmem:[#allocation2 + $0x30] sm:$0xff]  ;;  %vm815_vm11 = vcmp.eq.s32.totalorder %v799_v33, %v1391_v36 }
 0x17f   :  { %v626_v41 = vpop.xlane.xlu2 %625  ;;  %663 = vst.msk [vmem:[#allocation2 + $0x18] sm:$0xff] %vm85_vm5, %v646_v39  ;;  %873 = vperm.xlu2 %1128, %v831_v40   ;;  %v801_v39 = vadd.s32 64, %v1807_v34  ;;  %vm816_vm12 = vcmp.eq.s32.totalorder %v800_v37, %v1391_v36 }
 0x180   :  { %v650_v52 = vadd.f32 %v626_v41, %v602_v22 }
 0x181   :  { %vm817_vm13 = vcmp.eq.s32.totalorder %v801_v39, %v1391_v36 }
 0x182   :  { %667 = vst.msk [vmem:[#allocation2 + $0x38] sm:$0xff] %vm85_vm5, %v650_v52 }
 0x183   :  { %v839_v58 = vld [vmem:[#allocation2 + $0x70] sm:$0xff] }
 0x185   :  { %v1804_v29 = vpop.f32.mrf.mxu1 }
 0x186   :  { %v828_v43 = vld [vmem:[#allocation2 + $0x18] sm:$0xff] }
 0x187   :  { %v628_v44 = vpop.xlane.xlu0 %627  ;;  %v620_v46 = vpop.xlane.xlu2 %619  ;;  %858 = vperm.xlu2 %1128, %v828_v43  }
 0x188   :  { %v651_v47 = vadd.f32 %v628_v44, %v603_v63  ;;  %v647_v60 = vadd.f32 %v620_v46, %v599_v15  ;;  %v802_v44 = vadd.s32 72, %v1807_v34 }
 0x189   :  { %v832_v53 = vld [vmem:[#allocation2 + $0x38] sm:$0xff] }
 0x18a   :  { %668 = vst.msk [vmem:[#allocation2 + $0x40] sm:$0xff] %vm85_vm5, %v651_v47  ;;  %v642_v55 = vpop.xlane.xlu1 %641  ;;  %878 = vperm.xlu1 %1130, %v832_v53   ;;  %vm818_vm14 = vcmp.eq.s32.totalorder %v802_v44, %v1391_v36 }
 0x18b   :  { %664 = vst.msk [vmem:[#allocation2 + $0x20] sm:$0xff] %vm85_vm5, %v647_v60  ;;  %v658_v57 = vadd.f32 %v642_v55, %v610_v49  ;;  %v803_v60 = vadd.s32 80, %v1807_v34  ;;  %v804_v55 = vadd.s32 88, %v1807_v34 }
 0x18d   :  { %675 = vst.msk [vmem:[#allocation2 + $0x78] sm:$0xff] %vm85_vm5, %v658_v57  ;;  %v1815_v19 = vpop.f32.mrf.mxu1  ;;  %vm819_vm15 = vcmp.eq.s32.totalorder %v803_v60, %v1391_v36  ;;  %v805_v57 = vadd.s32 96, %v1807_v34  ;;  %vm820_vm0 = vcmp.eq.s32.totalorder %v804_v55, %v1391_v36 }
 0x18f   :  { %vm821_vm1 = vcmp.eq.s32.totalorder %v805_v57, %v1391_v36 }
 0x190   :  { %v632_v32 = vpop.xlane.xlu2 %631 }
 0x191   :  { %v833_v61 = vld [vmem:[#allocation2 + $0x40] sm:$0xff]  ;;  %v653_v45 = vadd.f32 %v632_v32, %v605_v59 }
 0x192   :  { %v630_v1 = vpop.xlane.xlu1 %629  ;;  %883 = vperm.xlu0 %1129, %v833_v61   ;;  %v829_v5 = vld [vmem:[#allocation2 + $0x20] sm:$0xff] }
 0x193   :  { %v652_v6 = vadd.f32 %v630_v1, %v604_v62  ;;  %863 = vperm.xlu2 %1128, %v829_v5   ;;  %670 = vst.msk [vmem:[#allocation2 + $0x50] sm:$0xff] %vm85_vm5, %v653_v45  ;;  %v634_v9 = vpop.xlane.xlu0 %633  ;;  %v806_v5 = vadd.s32 104, %v1807_v34 }
 0x194   :  { %v654_v7 = vadd.f32 %v634_v9, %v606_v38  ;;  %v840_v12 = vld [vmem:[#allocation2 + $0x78] sm:$0xff] }
 0x195   :  { %669 = vst.msk [vmem:[#allocation2 + $0x48] sm:$0xff] %vm85_vm5, %v652_v6  ;;  %v1822_v3 = vpop.f32.mrf.mxu1  ;;  %vm822_vm2 = vcmp.eq.s32.totalorder %v806_v5, %v1391_v36 }
 0x196   :  { %671 = vst.msk [vmem:[#allocation2 + $0x58] sm:$0xff] %vm85_vm5, %v654_v7 }
 0x19a   :  { %v835_v8 = vld [vmem:[#allocation2 + $0x50] sm:$0xff] }
 0x19b   :  { %893 = vperm.xlu1 %1130, %v835_v8   ;;  %v807_v8 = vadd.s32 112, %v1807_v34 }
 0x19c   :  { %v834_v10 = vld [vmem:[#allocation2 + $0x48] sm:$0xff] }
 0x19d   :  { %888 = vperm.xlu2 %1128, %v834_v10   ;;  %v836_v48 = vld [vmem:[#allocation2 + $0x58] sm:$0xff]  ;;  %v1829_v40 = vpop.f32.mrf.mxu1  ;;  %vm823_vm4 = vcmp.eq.s32.totalorder %v807_v8, %v1391_v36 }
 0x19e   :  { %898 = vperm.xlu0 %1129, %v836_v48   ;;  %v808_v48 = vadd.s32 120, %v1807_v34 }
 0x1a0   :  { %vm824_vm5 = vcmp.eq.s32.totalorder %v808_v48, %v1391_v36 }
 0x1a3   :  { %908 = vperm.xlu1 %1130, %v838_v14  }
 0x1a5   :  { %903 = vperm.xlu2 %1128, %v837_v21   ;;  %v1839_v59 = vpop.f32.mrf.mxu1 }
 0x1a6   :  { %913 = vperm.xlu0 %1129, %v839_v58  }
 0x1ad   :  { %918 = vperm.xlu2 %1128, %v840_v12   ;;  %v733_v58 = vpop.f32.mrf.mxu1 }
 0x1b5   :  { %v736_v34 = vpop.f32.mrf.mxu1 }
 0x1be   :  { %v844_v35 = vpop.permute.xlu2 %843 }
 0x1bf   :  { %v921_v20 = vsel %vm809_vm6, %v844_v35, 0.0 }
 0x1d9   :  { %v874_v13 = vpop.permute.xlu2 %873 }
 0x1da   :  { %v927_v41 = vsel %vm815_vm11, %v874_v13, 0.0 }
 0x1dc   :  { %v869_v23 = vpop.permute.xlu1 %868 }
 0x1dd   :  { %v926_v50 = vsel %vm814_vm10, %v869_v23, 0.0 }
 0x1df   :  { %v849_v2 = vpop.permute.xlu0 %848 }
 0x1e0   :  { %v922_v51 = vsel %vm810_vm3, %v849_v2, 0.0 }
 0x1e1   :  { %v859_v18 = vpop.permute.xlu2 %858  ;;  %v937_v25 = vadd.f32 %v922_v51, %v921_v20 }
 0x1e2   :  { %v924_v30 = vsel %vm812_vm8, %v859_v18, 0.0 }
 0x1ed   :  { %v864_v54 = vpop.permute.xlu2 %863 }
 0x1ee   :  { %v854_v24 = vpop.permute.xlu1 %853  ;;  %v925_v4 = vsel %vm813_vm9, %v864_v54, 0.0 }
 0x1ef   :  { %v923_v0 = vsel %vm811_vm7, %v854_v24, 0.0 }
 0x1f0   :  { %v938_v27 = vadd.f32 %v937_v25, %v923_v0 }
 0x1f2   :  { %v939_v31 = vadd.f32 %v938_v27, %v924_v30  ;;  %v739_v27 = vpop.f32.mrf.mxu1 }
 0x1f4   :  { %v940_v56 = vadd.f32 %v939_v31, %v925_v4 }
 0x1f6   :  { %v941_v22 = vadd.f32 %v940_v56, %v926_v50  ;;  %v712_v56 = vpop.f32.mrf.mxu0 }
 0x1f7   :  { %v889_v52 = vpop.permute.xlu2 %888 }
 0x1f8   :  { %v942_v15 = vadd.f32 %v941_v22, %v927_v41  ;;  %v930_v62 = vsel %vm818_vm14, %v889_v52, 0.0  ;;  %v751_v52 = vpop.f32.mrf.mxu3 }
 0x1fa   :  { %v742_v50 = vpop.f32.mrf.mxu1 }
 0x1fc   :  { %v879_v63 = vpop.permute.xlu1 %878 }
 0x1fd   :  { %v928_v46 = vsel %vm816_vm12, %v879_v63, 0.0 }
 0x1fe   :  { %v943_v49 = vadd.f32 %v942_v15, %v928_v46 }
 0x1ff   :  { %v904_v61 = vpop.permute.xlu2 %903 }
 0x200   :  { %v933_v10 = vsel %vm821_vm1, %v904_v61, 0.0 }
 0x204   :  { %v884_v43 = vpop.permute.xlu0 %883 }
 0x205   :  { %v929_v47 = vsel %vm817_vm13, %v884_v43, 0.0 }
 0x206   :  { %v944_v53 = vadd.f32 %v943_v49, %v929_v47  ;;  %v745_v49 = vpop.f32.mrf.mxu1 }
 0x207   :  { %v919_v35 = vpop.permute.xlu2 %918 }
 0x208   :  { %v945_v38 = vadd.f32 %v944_v53, %v930_v62  ;;  %v936_v2 = vsel %vm824_vm5, %v919_v35, 0.0 }
 0x20d   :  { %v894_v32 = vpop.permute.xlu1 %893 }
 0x20e   :  { %v931_v45 = vsel %vm819_vm15, %v894_v32, 0.0 }
 0x20f   :  { %v946_v1 = vadd.f32 %v945_v38, %v931_v45 }
 0x210   :  { %v899_v6 = vpop.permute.xlu0 %898 }
 0x211   :  { %v932_v9 = vsel %vm820_vm0, %v899_v6, 0.0 }
 0x212   :  { %v947_v7 = vadd.f32 %v946_v1, %v932_v9 }
 0x214   :  { %v948_v14 = vadd.f32 %v947_v7, %v933_v10 }
 0x215   :  { %v909_v21 = vpop.permute.xlu1 %908 }
 0x216   :  { %v934_v12 = vsel %vm822_vm2, %v909_v21, 0.0 }
 0x217   :  { %v949_v23 = vadd.f32 %v948_v14, %v934_v12 }
 0x218   :  { %v914_v13 = vpop.permute.xlu0 %913 }
 0x219   :  { %v935_v17 = vsel %vm823_vm4, %v914_v13, 0.0 }
 0x21a   :  { %v950_v11 = vadd.f32 %v949_v23, %v935_v17 }
 0x21c   :  { %v951_v18 = vadd.f32 %v950_v11, %v936_v2 }
 0x21e   :  { %v952_v24 = vrot.slane %v951_v18, 4 }
 0x220   :  { %v953_v51 = vadd.f32 %v952_v24, %v951_v18 }
 0x222   :  { %v954_v28 = vrot.slane %v953_v51, 2 }
 0x224   :  { %v955_v20 = vadd.f32 %v954_v28, %v953_v51 }
 0x226   :  { %v956_v0 = vrot.slane %v955_v20, 1 }
 0x228   :  { %v957_v25 = vadd.f32 %v956_v0, %v955_v20 }
 0x22a   :  { %1164 = vrcp.f32 %v957_v25  ;;  %v969_v31 = vand.u32 2147483648, %v957_v25  ;;  %v967_v33 = vand.u32 2147483647, %v957_v25  ;;  %vm963_vm6 = vweird.f32 %v957_v25 }
 0x22c   :  { %v970_v22 = vor.u32 1.1754944e-38, %v969_v31  ;;  %vm968_vm8 = vcmp.eq.f32.partialorder %v967_v33, 8.507059e+37 }
 0x230   :  { %v1165_v30 = vpop.eup %1164 }
 0x231   :  { %v959_v36 = vmul.f32 %v1165_v30, %v957_v25  ;;  %vm964_vm3 = vweird.f32 %v1165_v30 }
 0x232   :  { %vm965_vm7 = vmor %vm963_vm6, %vm964_vm3 }
 0x233   :  { %v960_v54 = vsub.f32 1.0, %v959_v36 }
 0x235   :  { %v961_v4 = vmul.f32 %v1165_v30, %v960_v54 }
 0x237   :  { %v962_v37 = vadd.f32 %v1165_v30, %v961_v4 }
 0x239   :  { %v966_v39 = vsel %vm965_vm7, %v1165_v30, %v962_v37 }
 0x23a   :  { %v971_v41 = vsel %vm968_vm8, %v970_v22, %v966_v39 }
 0x23b   :  { %v988_v63 = vmul.f32 %v971_v41, %v709_v26  ;;  %v989_v15 = vmul.f32 %v971_v41, %v712_v56  ;;  %v990_v43 = vmul.f32 %v971_v41, %v1802_v16  ;;  %v991_v44 = vmul.f32 %v971_v41, %v1804_v29  ;;  %v754_v16 = vpop.f32.mrf.mxu3 }
 0x23c   :  { %v992_v46 = vmul.f32 %v971_v41, %v1815_v19  ;;  %v993_v47 = vmul.f32 %v971_v41, %v1822_v3  ;;  %v994_v60 = vmul.f32 %v971_v41, %v1829_v40  ;;  %v995_v53 = vmul.f32 %v971_v41, %v1839_v59 }
 0x23d   :  { %1004 = vst [vmem:[#allocation9] sm:$0xff] %v988_v63  ;;  %v996_v55 = vmul.f32 %v971_v41, %v733_v58  ;;  %v997_v57 = vmul.f32 %v971_v41, %v736_v34  ;;  %v998_v62 = vmul.f32 %v971_v41, %v739_v27  ;;  %v999_v29 = vmul.f32 %v971_v41, %v742_v50 }
 0x23e   :  { %1005 = vst [vmem:[#allocation9 + $0x8] sm:$0xff] %v989_v15  ;;  %v1000_v19 = vmul.f32 %v971_v41, %v745_v49  ;;  %v1001_v3 = vmul.f32 %v971_v41, %v748_v42  ;;  %v1002_v32 = vmul.f32 %v971_v41, %v751_v52  ;;  %v1003_v40 = vmul.f32 %v971_v41, %v754_v16 }
 0x23f   :  { %1006 = vst [vmem:[#allocation9 + $0x10] sm:$0xff] %v990_v43 }
 0x240   :  { %1007 = vst [vmem:[#allocation9 + $0x18] sm:$0xff] %v991_v44 }
 0x241   :  { %1008 = vst [vmem:[#allocation9 + $0x20] sm:$0xff] %v992_v46 }
 0x242   :  { %1009 = vst [vmem:[#allocation9 + $0x28] sm:$0xff] %v993_v47 }
 0x243   :  { %1010 = vst [vmem:[#allocation9 + $0x30] sm:$0xff] %v994_v60 }
 0x244   :  { %1011 = vst [vmem:[#allocation9 + $0x38] sm:$0xff] %v995_v53 }
 0x245   :  { %1012 = vst [vmem:[#allocation9 + $0x40] sm:$0xff] %v996_v55 }
 0x246   :  { %1013 = vst [vmem:[#allocation9 + $0x48] sm:$0xff] %v997_v57 }
 0x247   :  { %1014 = vst [vmem:[#allocation9 + $0x50] sm:$0xff] %v998_v62 }
 0x248   :  { %1015 = vst [vmem:[#allocation9 + $0x58] sm:$0xff] %v999_v29 }
 0x249   :  { %1016 = vst [vmem:[#allocation9 + $0x60] sm:$0xff] %v1000_v19 }
 0x24a   :  { %1017 = vst [vmem:[#allocation9 + $0x68] sm:$0xff] %v1001_v3 }
 0x24b   :  { %1018 = vst [vmem:[#allocation9 + $0x70] sm:$0xff] %v1002_v32 }
 0x24c   :  { %1019 = vst [vmem:[#allocation9 + $0x78] sm:$0xff] %v1003_v40 }
 0x24d   :  { %1032 = dma.vmem_to_hbm [thread:$0]  %s1025_s5, 2048, %s1027_s8, [#allocation5], %s1269_s23, %s1269_s23, %s1270_s24  }
 0x24e   :  { %1266 = dma.done.wait [#allocation5], 2048  }
 0x24f   :  { %1267 = vsyncadd [#allocation5], 4294965248 }
 0x250   :  { %1037 = vsyncpa [#allocation4], 1 }
 0x251   :  { %1038 = vsyncpa [#allocation7], 1 }
 0x252   :  { %1039 = vsyncpa [#allocation5], 1 }

</bundles_post_ra>
